<compile_context>
chip_gen: v5e
topology: v5e:2x2
jax: 0.10.0
libtpu: 0.0.40
codegen_flags: <defaults>
</compile_context>

<pallas_src>
import jax
import jax.numpy as jnp
from jax.experimental import pallas as pl
from jax.experimental.pallas import tpu as pltpu


def _lastconv_kernel(x_ref, w_ref, b_ref, o_ref):
    # x_ref: (C_in, T)  VMEM tile, spatial on lanes (lane-dense).
    # w_ref: (C_out, C_in) in SMEM; b_ref: (C_out,) in SMEM (scalar reads).
    # o_ref: (C_out, T) VMEM tile.
    c_out, c_in = w_ref.shape            # static Python ints
    x = x_ref[...]                       # (C_in, T) f32
    for o in range(c_out):               # tiny static unroll over output rows
        acc = x[0:1, :] * w_ref[o, 0]
        for c in range(1, c_in):         # C_in x C_out contraction on the VPU
            acc = acc + x[c:c + 1, :] * w_ref[o, c]
        acc = acc + b_ref[o]
        # exp lowers to the EUP slot -> essentially free under the HBM stream.
        o_ref[o:o + 1, :] = jax.nn.sigmoid(acc).astype(o_ref.dtype)


def last_conv_pallas(x_ncdhw, weight, bias, *,
                     col_block_bytes=2 * 1024 * 1024,
                     vmem_limit_bytes=32 * 1024 * 1024):
    """x_ncdhw: (N, C_in, D, H, W); weight: (C_out, C_in, 1, 1, 1); bias: (C_out,)."""
    n, c_in, d, h, w = x_ncdhw.shape
    c_out = weight.shape[0]
    dhw = d * h * w

    # NCDHW already has channels ahead of spatial: a pure reshape gives the
    # channels-on-sublane / spatial-on-lane layout.  No transpose, no pad.
    x3 = x_ncdhw.reshape(n, c_in, dhw)
    w2 = weight.reshape(c_out, c_in)
    b1 = bias.reshape(c_out)

    # Column tile: biggest multiple of 128 whose input block stays under
    # col_block_bytes.  Double-buffered in+out then fits comfortably in every
    # generation's scoped VMEM (v5e 16 MiB default included).
    itemsize = jnp.dtype(x_ncdhw.dtype).itemsize
    max_cols = max(128, (col_block_bytes // (c_in * itemsize)) // 128 * 128)
    if dhw <= max_cols:
        t_cols = dhw                     # full-extent lane block (always legal)
        n_col_tiles = 1
    else:
        t_cols = max_cols
        # Edge block (if dhw % t_cols != 0) is input-padded / output-masked by
        # the Pallas pipeline -- garbage tail never reaches the caller.
        n_col_tiles = pl.cdiv(dhw, t_cols)

    out3 = pl.pallas_call(
        _lastconv_kernel,
        out_shape=jax.ShapeDtypeStruct((n, c_out, dhw), x_ncdhw.dtype),
        grid_spec=pltpu.PrefetchScalarGridSpec(
            num_scalar_prefetch=0,
            grid=(n, n_col_tiles),
            in_specs=[
                # batch dim squeezed; kernel sees (C_in, T)
                pl.BlockSpec((None, c_in, t_cols), lambda b, j: (b, 0, j)),
                # small weight / bias live whole in SMEM for scalar reads
                pl.BlockSpec(memory_space=pltpu.MemorySpace.SMEM),
                pl.BlockSpec(memory_space=pltpu.MemorySpace.SMEM),
            ],
            out_specs=pl.BlockSpec((None, c_out, t_cols), lambda b, j: (b, 0, j)),
        ),
        compiler_params=pltpu.CompilerParams(
            dimension_semantics=("parallel", "parallel"),
            vmem_limit_bytes=vmem_limit_bytes,
        ),
    )(x3, w2, b1)

    return out3.reshape(n, c_out, d, h, w)   # NCDHW, matches the PyTorch module


def reference(x_ncdhw, weight, bias):
    # Pure-JAX reference of Conv3d(k=1) + sigmoid.
    w_mat = weight.reshape(weight.shape[0], weight.shape[1])  # (C_out, C_in)
    y = jnp.einsum("ncdhw,oc->nodhw", x_ncdhw, w_mat) + bias[None, :, None, None, None]
    return jax.nn.sigmoid(y)


if __name__ == "__main__":
    key = jax.random.PRNGKey(0)
    k_x, k_w, k_b = jax.random.split(key, 3)

    N, C_IN, C_OUT, D, H, W = 2, 4, 3, 4, 8, 8

    x = jax.random.normal(k_x, (N, C_IN, D, H, W), dtype=jnp.float32)
    # Deterministic parameter init (mimics Conv3d's fan-in uniform scale).
    bound = 1.0 / (C_IN ** 0.5)
    weight = jax.random.uniform(k_w, (C_OUT, C_IN, 1, 1, 1),
                                minval=-bound, maxval=bound, dtype=jnp.float32)
    bias = jax.random.uniform(k_b, (C_OUT,),
                              minval=-bound, maxval=bound, dtype=jnp.float32)

    out = last_conv_pallas(x, weight, bias)
    out = jax.block_until_ready(out)

    ref = reference(x, weight, bias)
    assert out.shape == (N, C_OUT, D, H, W)
    assert jnp.allclose(out, ref, atol=1e-5, rtol=1e-5)

    print("KERNEL_OK")
</pallas_src>

<mosaic_0001>
module attributes {stable_mosaic.version = 11 : i64} {
  func.func @_lastconv_kernel(%arg0: i32, %arg1: i32, %arg2: memref<1x4x256xf32, #tpu.memory_space<vmem>>, %arg3: memref<3x4xf32, #tpu.memory_space<smem>>, %arg4: memref<3xf32, #tpu.memory_space<smem>>, %arg5: memref<1x3x256xf32, #tpu.memory_space<vmem>>) attributes {dimension_semantics = [#tpu.dimension_semantics<parallel>, #tpu.dimension_semantics<parallel>], iteration_bounds = array<i64: 2, 1>, scalar_prefetch = 0 : i64, scratch_operands = 0 : i64, tpu.core_type = #tpu.core_type<tc>, window_params = [{transform_indices = @transform_0, window_bounds = array<i64: 1, 4, 256>}, {transform_indices = @transform_1, window_bounds = array<i64: 3, 4>}, {transform_indices = @transform_2, window_bounds = array<i64: 3>}, {transform_indices = @transform_3, window_bounds = array<i64: 1, 3, 256>}]} {
    %c0 = arith.constant 0 : index
    %c0_0 = arith.constant 0 : index
    %c0_1 = arith.constant 0 : index
    %0 = vector.load %arg2[%c0, %c0_0, %c0_1] : memref<1x4x256xf32, #tpu.memory_space<vmem>>, vector<1x4x256xf32>
    %1 = vector.shape_cast %0 : vector<1x4x256xf32> to vector<4x256xf32>
    %2 = vector.extract_strided_slice %1 {offsets = [0, 0], sizes = [1, 256], strides = [1, 1]} : vector<4x256xf32> to vector<1x256xf32>
    %c0_2 = arith.constant 0 : index
    %c0_3 = arith.constant 0 : index
    %3 = memref.load %arg3[%c0_2, %c0_3] : memref<3x4xf32, #tpu.memory_space<smem>>
    %4 = vector.broadcast %3 : f32 to vector<1x256xf32>
    %5 = arith.mulf %2, %4 : vector<1x256xf32>
    %6 = vector.extract_strided_slice %1 {offsets = [1, 0], sizes = [1, 256], strides = [1, 1]} : vector<4x256xf32> to vector<1x256xf32>
    %c0_4 = arith.constant 0 : index
    %c1 = arith.constant 1 : index
    %7 = memref.load %arg3[%c0_4, %c1] : memref<3x4xf32, #tpu.memory_space<smem>>
    %8 = vector.broadcast %7 : f32 to vector<1x256xf32>
    %9 = arith.mulf %6, %8 : vector<1x256xf32>
    %10 = arith.addf %5, %9 : vector<1x256xf32>
    %11 = vector.extract_strided_slice %1 {offsets = [2, 0], sizes = [1, 256], strides = [1, 1]} : vector<4x256xf32> to vector<1x256xf32>
    %c0_5 = arith.constant 0 : index
    %c2 = arith.constant 2 : index
    %12 = memref.load %arg3[%c0_5, %c2] : memref<3x4xf32, #tpu.memory_space<smem>>
    %13 = vector.broadcast %12 : f32 to vector<1x256xf32>
    %14 = arith.mulf %11, %13 : vector<1x256xf32>
    %15 = arith.addf %10, %14 : vector<1x256xf32>
    %16 = vector.extract_strided_slice %1 {offsets = [3, 0], sizes = [1, 256], strides = [1, 1]} : vector<4x256xf32> to vector<1x256xf32>
    %c0_6 = arith.constant 0 : index
    %c3 = arith.constant 3 : index
    %17 = memref.load %arg3[%c0_6, %c3] : memref<3x4xf32, #tpu.memory_space<smem>>
    %18 = vector.broadcast %17 : f32 to vector<1x256xf32>
    %19 = arith.mulf %16, %18 : vector<1x256xf32>
    %20 = arith.addf %15, %19 : vector<1x256xf32>
    %c0_7 = arith.constant 0 : index
    %21 = memref.load %arg4[%c0_7] : memref<3xf32, #tpu.memory_space<smem>>
    %22 = vector.broadcast %21 : f32 to vector<1x256xf32>
    %23 = arith.addf %20, %22 : vector<1x256xf32>
    %24 = arith.negf %23 : vector<1x256xf32>
    %25 = math.exp %24 : vector<1x256xf32>
    %cst = arith.constant 1.000000e+00 : f32
    %26 = vector.broadcast %cst : f32 to vector<1x256xf32>
    %27 = arith.addf %26, %25 : vector<1x256xf32>
    %28 = arith.divf %26, %27 : vector<1x256xf32>
    %c0_8 = arith.constant 0 : index
    %c0_9 = arith.constant 0 : index
    %c0_10 = arith.constant 0 : index
    %29 = vector.load %arg5[%c0_8, %c0_9, %c0_10] : memref<1x3x256xf32, #tpu.memory_space<vmem>>, vector<1x1x256xf32>
    %30 = vector.shape_cast %29 : vector<1x1x256xf32> to vector<1x256xf32>
    %31 = vector.shape_cast %28 : vector<1x256xf32> to vector<1x1x256xf32>
    tpu.vector_store %arg5[%c0_8, %c0_9, %c0_10], %31 {strides = array<i32>} : memref<1x3x256xf32, #tpu.memory_space<vmem>>, vector<1x1x256xf32>,
    %32 = vector.extract_strided_slice %1 {offsets = [0, 0], sizes = [1, 256], strides = [1, 1]} : vector<4x256xf32> to vector<1x256xf32>
    %c1_11 = arith.constant 1 : index
    %c0_12 = arith.constant 0 : index
    %33 = memref.load %arg3[%c1_11, %c0_12] : memref<3x4xf32, #tpu.memory_space<smem>>
    %34 = vector.broadcast %33 : f32 to vector<1x256xf32>
    %35 = arith.mulf %32, %34 : vector<1x256xf32>
    %36 = vector.extract_strided_slice %1 {offsets = [1, 0], sizes = [1, 256], strides = [1, 1]} : vector<4x256xf32> to vector<1x256xf32>
    %c1_13 = arith.constant 1 : index
    %c1_14 = arith.constant 1 : index
    %37 = memref.load %arg3[%c1_13, %c1_14] : memref<3x4xf32, #tpu.memory_space<smem>>
    %38 = vector.broadcast %37 : f32 to vector<1x256xf32>
    %39 = arith.mulf %36, %38 : vector<1x256xf32>
    %40 = arith.addf %35, %39 : vector<1x256xf32>
    %41 = vector.extract_strided_slice %1 {offsets = [2, 0], sizes = [1, 256], strides = [1, 1]} : vector<4x256xf32> to vector<1x256xf32>
    %c1_15 = arith.constant 1 : index
    %c2_16 = arith.constant 2 : index
    %42 = memref.load %arg3[%c1_15, %c2_16] : memref<3x4xf32, #tpu.memory_space<smem>>
    %43 = vector.broadcast %42 : f32 to vector<1x256xf32>
    %44 = arith.mulf %41, %43 : vector<1x256xf32>
    %45 = arith.addf %40, %44 : vector<1x256xf32>
    %46 = vector.extract_strided_slice %1 {offsets = [3, 0], sizes = [1, 256], strides = [1, 1]} : vector<4x256xf32> to vector<1x256xf32>
    %c1_17 = arith.constant 1 : index
    %c3_18 = arith.constant 3 : index
    %47 = memref.load %arg3[%c1_17, %c3_18] : memref<3x4xf32, #tpu.memory_space<smem>>
    %48 = vector.broadcast %47 : f32 to vector<1x256xf32>
    %49 = arith.mulf %46, %48 : vector<1x256xf32>
    %50 = arith.addf %45, %49 : vector<1x256xf32>
    %c1_19 = arith.constant 1 : index
    %51 = memref.load %arg4[%c1_19] : memref<3xf32, #tpu.memory_space<smem>>
    %52 = vector.broadcast %51 : f32 to vector<1x256xf32>
    %53 = arith.addf %50, %52 : vector<1x256xf32>
    %54 = arith.negf %53 : vector<1x256xf32>
    %55 = math.exp %54 : vector<1x256xf32>
    %cst_20 = arith.constant 1.000000e+00 : f32
    %56 = vector.broadcast %cst_20 : f32 to vector<1x256xf32>
    %57 = arith.addf %56, %55 : vector<1x256xf32>
    %58 = arith.divf %56, %57 : vector<1x256xf32>
    %c0_21 = arith.constant 0 : index
    %c1_22 = arith.constant 1 : index
    %c0_23 = arith.constant 0 : index
    %59 = vector.load %arg5[%c0_21, %c1_22, %c0_23] : memref<1x3x256xf32, #tpu.memory_space<vmem>>, vector<1x1x256xf32>
    %60 = vector.shape_cast %59 : vector<1x1x256xf32> to vector<1x256xf32>
    %61 = vector.shape_cast %58 : vector<1x256xf32> to vector<1x1x256xf32>
    tpu.vector_store %arg5[%c0_21, %c1_22, %c0_23], %61 {strides = array<i32>} : memref<1x3x256xf32, #tpu.memory_space<vmem>>, vector<1x1x256xf32>,
    %62 = vector.extract_strided_slice %1 {offsets = [0, 0], sizes = [1, 256], strides = [1, 1]} : vector<4x256xf32> to vector<1x256xf32>
    %c2_24 = arith.constant 2 : index
    %c0_25 = arith.constant 0 : index
    %63 = memref.load %arg3[%c2_24, %c0_25] : memref<3x4xf32, #tpu.memory_space<smem>>
    %64 = vector.broadcast %63 : f32 to vector<1x256xf32>
    %65 = arith.mulf %62, %64 : vector<1x256xf32>
    %66 = vector.extract_strided_slice %1 {offsets = [1, 0], sizes = [1, 256], strides = [1, 1]} : vector<4x256xf32> to vector<1x256xf32>
    %c2_26 = arith.constant 2 : index
    %c1_27 = arith.constant 1 : index
    %67 = memref.load %arg3[%c2_26, %c1_27] : memref<3x4xf32, #tpu.memory_space<smem>>
    %68 = vector.broadcast %67 : f32 to vector<1x256xf32>
    %69 = arith.mulf %66, %68 : vector<1x256xf32>
    %70 = arith.addf %65, %69 : vector<1x256xf32>
    %71 = vector.extract_strided_slice %1 {offsets = [2, 0], sizes = [1, 256], strides = [1, 1]} : vector<4x256xf32> to vector<1x256xf32>
    %c2_28 = arith.constant 2 : index
    %c2_29 = arith.constant 2 : index
    %72 = memref.load %arg3[%c2_28, %c2_29] : memref<3x4xf32, #tpu.memory_space<smem>>
    %73 = vector.broadcast %72 : f32 to vector<1x256xf32>
    %74 = arith.mulf %71, %73 : vector<1x256xf32>
    %75 = arith.addf %70, %74 : vector<1x256xf32>
    %76 = vector.extract_strided_slice %1 {offsets = [3, 0], sizes = [1, 256], strides = [1, 1]} : vector<4x256xf32> to vector<1x256xf32>
    %c2_30 = arith.constant 2 : index
    %c3_31 = arith.constant 3 : index
    %77 = memref.load %arg3[%c2_30, %c3_31] : memref<3x4xf32, #tpu.memory_space<smem>>
    %78 = vector.broadcast %77 : f32 to vector<1x256xf32>
    %79 = arith.mulf %76, %78 : vector<1x256xf32>
    %80 = arith.addf %75, %79 : vector<1x256xf32>
    %c2_32 = arith.constant 2 : index
    %81 = memref.load %arg4[%c2_32] : memref<3xf32, #tpu.memory_space<smem>>
    %82 = vector.broadcast %81 : f32 to vector<1x256xf32>
    %83 = arith.addf %80, %82 : vector<1x256xf32>
    %84 = arith.negf %83 : vector<1x256xf32>
    %85 = math.exp %84 : vector<1x256xf32>
    %cst_33 = arith.constant 1.000000e+00 : f32
    %86 = vector.broadcast %cst_33 : f32 to vector<1x256xf32>
    %87 = arith.addf %86, %85 : vector<1x256xf32>
    %88 = arith.divf %86, %87 : vector<1x256xf32>
    %c0_34 = arith.constant 0 : index
    %c2_35 = arith.constant 2 : index
    %c0_36 = arith.constant 0 : index
    %89 = vector.load %arg5[%c0_34, %c2_35, %c0_36] : memref<1x3x256xf32, #tpu.memory_space<vmem>>, vector<1x1x256xf32>
    %90 = vector.shape_cast %89 : vector<1x1x256xf32> to vector<1x256xf32>
    %91 = vector.shape_cast %88 : vector<1x256xf32> to vector<1x1x256xf32>
    tpu.vector_store %arg5[%c0_34, %c2_35, %c0_36], %91 {strides = array<i32>} : memref<1x3x256xf32, #tpu.memory_space<vmem>>, vector<1x1x256xf32>,
    return
  }
  func.func @transform_0(%arg0: i32, %arg1: i32) -> (i32, i32, i32) {
    %c0_i32 = arith.constant 0 : i32
    %c0_i32_0 = arith.constant 0 : i32
    return %arg0, %c0_i32, %arg1 : i32, i32, i32
  }
  func.func @transform_1(%arg0: i32, %arg1: i32) -> (i32, i32) {
    %c0_i32 = arith.constant 0 : i32
    %c0_i32_0 = arith.constant 0 : i32
    %c0_i32_1 = arith.constant 0 : i32
    return %c0_i32, %c0_i32_0 : i32, i32
  }
  func.func @transform_2(%arg0: i32, %arg1: i32) -> i32 {
    %c0_i32 = arith.constant 0 : i32
    %c0_i32_0 = arith.constant 0 : i32
    return %c0_i32 : i32
  }
  func.func @transform_3(%arg0: i32, %arg1: i32) -> (i32, i32, i32) {
    %c0_i32 = arith.constant 0 : i32
    %c0_i32_0 = arith.constant 0 : i32
    return %arg0, %c0_i32, %arg1 : i32, i32, i32
  }
}

</mosaic_0001>

<bundles_post_ra>
// kernel: tpu_custom_call.1
= control target key start
LH: loop header
LB: loop body
LE: loop exit
PB: predicated region body
PF: predicated region fallthrough
CT: control target
= control target key end

     0   :  { %8 = vsyncpa [#allocation3], 0  ;;  %s955_s0 = inlined_call_operand.hbm [shape: f32[2,4,256], index: 0, kind: input, shape index: {}]   ;;  %s956_s1 = inlined_call_operand.hbm [shape: f32[3,4], index: 1, kind: input, shape index: {}]   ;;  %s957_s2 = inlined_call_operand.vmem [shape: f32[3], index: 2, kind: input, shape index: {}]   ;;  %s958_s3 = inlined_call_operand.vmem [shape: f32[2,3,256], index: 3, kind: output, shape index: {}]  }
   0x1   :  { %10 = vsyncpa [#allocation3 + $0x1], 0 }
   0x2   :  { %11 = vsyncpa [#allocation4], 0 }
   0x3   :  { %12 = vsyncpa [#allocation5], 0  ;;  %s811_s12 = smov 0   ;;  %s813_s13 = smov 0  }
   0x4   :  { %s815_s14 = smov 0   ;;  %s817_s15 = smov 0  }
   0x5   :  { %s819_s16 = smov 0   ;;  %s821_s17 = smov 0  }
   0x6 LB: > { %s535_s18 = sadd.s32 4294967295, %s787_s17   ;;  %p52_p0 = scmp.ne.s32.totalorder %s771_s13, %s767_s12  ;;  %s787_s17 = sphi %s821_s17, %s18_s17   ;;  %s783_s16 = sphi %s819_s16, %s969_s16   ;;  %s779_s15 = sphi %s817_s15, %s968_s15   ;;  %s775_s14 = sphi %s815_s14, %s967_s14   ;;  %s771_s13 = sphi %s813_s13, %s966_s13   ;;  %s767_s12 = sphi %s811_s12, %s965_s12  }
   0x7   : > { %p841_p1 = scmp.eq.s32.totalorder %s535_s18, 0  ;;  %p537_p2 = scmp.ge.s32.totalorder %s787_s17, 1 }
   0x8   : > { %p133_p3 = scmp.lt.s32.totalorder %s787_s17, 3  ;;  %s145_s23 = sshll.u32 %s956_s1, 4  ;;  %s146_s23 = int_to_ptr.hbm [resolvable:$true] %s145_s23 }
   0x9   : > { %p849_p4 = por %p841_p1, %p52_p0  ;;  %s155_s27 = sshll.u32 %s957_s2, 4  ;;  %s156_s27 = int_to_ptr.vmem [resolvable:$true] %s155_s27 }
   0xa   : > { %p856_p5 = pnand %p537_p2, %p133_p3  ;;  %s789_s28 = smov [#allocation6]  }
   0xb   : > { %s790_s29 = smov [#allocation7]   ;;  %s30_s30 = sadd.s32 1, %s783_s16 }
   0xc   : > { %p591_p6 = pneg %p856_p5  ;;  %s39_s4 = sadd.s32 1, %s775_s14 }
   0xd   : > { %p32_p8 = scmp.ge.s32.totalorder %s30_s30, 2  ;;  %p46_p9 = scmp.ne.s32.totalorder %s775_s14, %s771_s13 }
   0xe   : > { %p592_p7 = pnand %p591_p6, %p841_p1  ;;  %p47_p10 = scmp.eq.s32.totalorder %s787_s17, 0 }
   0xf   : > { %p604_p11 = scmp.lt.s32.totalorder %s787_s17, 2  ;;  %s971_s30 = smov (%p32_p8, %s30_s30), 0 }
  0x10   : > { %594 = dma.hbm_to_smem (!%p592_p7), %s146_s23, 64, %s789_s28, [#allocation4]  }
  0x11   : > { %597 = dma.vmem_to_smem (!%p592_p7), %s156_s27, 16, %s790_s29, [#allocation5]  }
  0x12   : > { %p875_p12 = por %p47_p10, %p46_p9  ;;  %s166_s6 = sand.u32 1, %s775_s14  }
  0x13   : > { %s34_s7 = ssub.s32 %s783_s16, %s971_s30  ;;  %s541_s8 = sshll.u32 %s166_s6, 3 }
  0x14   : > { %p37_p13 = scmp.eq.s32.totalorder %s34_s7, 0  ;;  %s579_s9 = sshll.u32 %s783_s16, 3 }
  0x15   : > { %s177_s18 = scalar_lea.hbm %s955_s0, %s579_s9  ;;  %s170_s21 = scalar_lea.vmem [#allocation2], %s541_s8 }
  0x16   : > { %s884_s10 = scalar_select %p37_p13, %s775_s14, %s39_s4  }
  0x17   : > { %s181_s22 = sshll.u32 %s170_s21, 4  ;;  %s179_s23 = sshll.u32 %s177_s18, 4  ;;  %s182_s22 = int_to_ptr.vmem [resolvable:$true] %s181_s22  ;;  %s180_s23 = int_to_ptr.hbm [resolvable:$true] %s179_s23 }
  0x18   : > { %p599_p0 = pnand %p604_p11, %p875_p12  ;;  %s167_s25 = scalar_lea.sflag [#allocation3], %s166_s6 }
  0x19   : > { %190 = sbr.rel (%p856_p5) target bundleno = 99 (0x63), region = 32  ;;  %s192_s26 = sand.u32 (!%p856_p5), 1, %s771_s13  }
  0x1a   : > { %601 = dma.hbm_to_vmem [thread:$0]  (!%p599_p0), %s180_s23, 128, %s182_s22, %s167_s25  }
  0x1b   : > { %s545_s27 = sshll.u32 (!%p856_p5), %s192_s26, 3  ;;  %s193_s28 = scalar_lea.sflag (!%p856_p5), [#allocation3], %s192_s26 }
  0x1c   : > { %s196_s29 = scalar_lea.vmem (!%p856_p5), [#allocation2], %s545_s27 }
  0x1e   : > { %754 = dma.done.wait (%p849_p4), %s193_s28, 128  }
  0x1f   : > { %756 = vsyncadd (%p849_p4), %s193_s28, 4294967168 }
  0x20   : > { %758 = dma.done.wait (%p841_p1), [#allocation4], 64  }
  0x21   : > { %760 = vsyncadd (%p841_p1), [#allocation4], 4294967232 }
  0x22   : > { %762 = dma.done.wait (%p841_p1), [#allocation5], 16  }
  0x23   : > { %764 = vsyncadd (%p841_p1), [#allocation5], 4294967280 }
  0x24   : > { %212 = sfence }
  0x25   : > { %s247_s24 = sld [smem:[#allocation6]]  ;;  %v246_v0 = vld [vmem:[%s196_s29] sm:$0xff]  ;;  %p237_p1 = scmp.lt.s32.totalorder %s779_s15, 1  ;;  %vm298_vm6 = vcmask 1040384  }
  0x26   : > { %s550_s4 = sld [smem:[#allocation6 + $0x1]] }
  0x27   : > { %s552_s5 = sld [smem:[#allocation6 + $0x2]]  ;;  %s973_s15 = smov (!%p237_p1, %s779_s15), 1 }
  0x28   : > { %s554_s6 = sld [smem:[#allocation6 + $0x3]]  ;;  %s580_s25 = sshll.u32 %s973_s15, 3 }
  0x29   : > { %s908_s20 = sld [smem:[#allocation7]]  ;;  %s919_s28 = scalar_lea.vmem %s958_s3, %s580_s25 }
  0x2a   : > { %s557_s7 = sld [smem:[#allocation6 + $0x80]] }
  0x2b   : > { %v248_v1 = vstv %s247_s24  ;;  %s558_s8 = sld [smem:[#allocation6 + $0x81]] }
  0x2c   : > { %v251_v2 = vstv %s550_s4  ;;  %v249_v3 = vmul.f32 %v248_v1, %v246_v0  ;;  %s560_s9 = sld [smem:[#allocation6 + $0x82]] }
  0x2d   : > { %v252_v4 = vmul.f32 %v251_v2, %v246_v0  ;;  %v259_v5 = vstv %s552_s5  ;;  %s562_s11 = sld [smem:[#allocation6 + $0x83]] }
  0x2e   : > { %v260_v7 = vmul.f32 %v259_v5, %v246_v0  ;;  %v267_v8 = vstv %s554_s6  ;;  %s910_s19 = sld [smem:[#allocation7 + $0x1]] }
  0x2f   : > { %v551_v6 = vrot.slane %v252_v4, 9  ;;  %v268_v9 = vmul.f32 %v267_v8, %v246_v0  ;;  %s567_s12 = sld [smem:[#allocation6 + $0x100]]  ;;  %v275_v19 = vstv %s908_s20 }
  0x30   : > { %v553_v11 = vrot.slane %v260_v7, 10  ;;  %v307_v12 = vstv %s557_s7  ;;  %s568_s18 = sld [smem:[#allocation6 + $0x101]] }
  0x31   : > { %v257_v10 = vadd.f32 %v551_v6, %v249_v3  ;;  %v555_v13 = vrot.slane %v268_v9, 11  ;;  %v310_v14 = vstv %s558_s8  ;;  %s570_s21 = sld [smem:[#allocation6 + $0x102]]  ;;  %v308_v16 = vmul.f32 %v307_v12, %v246_v0 }
  0x32   : > { %v311_v17 = vmul.f32 %v310_v14, %v246_v0  ;;  %v318_v18 = vstv %s560_s9  ;;  %s572_s22 = sld [smem:[#allocation6 + $0x103]]  ;;  %v301_v3 = vlaneseq }
  0x33   : > { %v265_v15 = vadd.f32 %v553_v11, %v257_v10  ;;  %v319_v20 = vmul.f32 %v318_v18, %v246_v0  ;;  %v326_v21 = vstv %s562_s11  ;;  %s574_s23 = sld [smem:[#allocation7 + $0x2]] }
  0x34   : > { %v559_v23 = vrot.slane %v311_v17, 9  ;;  %v327_v25 = vmul.f32 %v326_v21, %v246_v0  ;;  %v334_v37 = vstv %s910_s19  ;;  %vm921_vm7 = vcmp.lt.s32.totalorder %v301_v3, 256 }
  0x35   : > { %v273_v22 = vadd.f32 %v555_v13, %v265_v15  ;;  %v561_v24 = vrot.slane %v319_v20, 10  ;;  %v362_v26 = vstv %s567_s12 }
  0x36   : > { %v316_v28 = vadd.f32 %v559_v23, %v308_v16  ;;  %v563_v29 = vrot.slane %v327_v25, 11  ;;  %v363_v30 = vmul.f32 %v362_v26, %v246_v0  ;;  %v365_v31 = vstv %s568_s18 }
  0x37   : > { %v276_v27 = vadd.f32 %v275_v19, %v273_v22  ;;  %v373_v32 = vstv %s570_s21  ;;  %v366_v35 = vmul.f32 %v365_v31, %v246_v0 }
  0x38   : > { %v324_v34 = vadd.f32 %v561_v24, %v316_v28  ;;  %v374_v36 = vmul.f32 %v373_v32, %v246_v0  ;;  %v381_v38 = vstv %s572_s22 }
  0x39   : > { %v556_v33 = vmul.f32 -1.442695, %v276_v27  ;;  %v569_v40 = vrot.slane %v366_v35, 9  ;;  %v382_v42 = vmul.f32 %v381_v38, %v246_v0  ;;  %v389_v48 = vstv %s574_s23 }
  0x3a   : > { %v332_v39 = vadd.f32 %v563_v29, %v324_v34  ;;  %v571_v41 = vrot.slane %v374_v36, 10 }
  0x3b   : > { %657 = vpow2.f32 %v556_v33  ;;  %v371_v44 = vadd.f32 %v569_v40, %v363_v30  ;;  %v573_v45 = vrot.slane %v382_v42, 11 }
  0x3c   : > { %v335_v43 = vadd.f32 %v334_v37, %v332_v39 }
  0x3d   : > { %v379_v47 = vadd.f32 %v571_v41, %v371_v44 }
  0x3e   : > { %v565_v46 = vmul.f32 -1.442695, %v335_v43 }
  0x3f   : > { %v387_v50 = vadd.f32 %v573_v45, %v379_v47 }
  0x40   : > { %659 = vpow2.f32 %v565_v46 }
  0x41   : > { %v658_v49 = vpop.eup %657  ;;  %v390_v52 = vadd.f32 %v389_v48, %v387_v50 }
  0x42   : > { %v280_v51 = vadd.f32 1.0, %v658_v49 }
  0x43   : > { %v575_v53 = vmul.f32 -1.442695, %v390_v52 }
  0x44   : > { %661 = vrcp.f32 %v280_v51  ;;  %v292_v58 = vand.u32 2147483648, %v280_v51  ;;  %vm286_vm0 = vweird.f32 %v280_v51  ;;  %v290_v61 = vand.u32 2147483647, %v280_v51 }
  0x45   : > { %663 = vpow2.f32 %v575_v53 }
  0x46   : > { %v660_v54 = vpop.eup %659  ;;  %v293_v1 = vor.u32 1.1754944e-38, %v292_v58  ;;  %vm291_vm3 = vcmp.eq.f32.partialorder %v290_v61, 8.507059e+37 }
  0x47   : > { %v339_v55 = vadd.f32 1.0, %v660_v54 }
  0x49   : > { %665 = vrcp.f32 %v339_v55  ;;  %vm345_vm4 = vweird.f32 %v339_v55  ;;  %v351_v5 = vand.u32 2147483648, %v339_v55  ;;  %v349_v8 = vand.u32 2147483647, %v339_v55 }
  0x4a   : > { %v662_v56 = vpop.eup %661 }
  0x4b   : > { %v282_v57 = vmul.f32 %v662_v56, %v280_v51  ;;  %v664_v59 = vpop.eup %663  ;;  %vm287_vm1 = vweird.f32 %v662_v56  ;;  %v352_v14 = vor.u32 1.1754944e-38, %v351_v5  ;;  %vm350_vm9 = vcmp.eq.f32.partialorder %v349_v8, 8.507059e+37 }
  0x4c   : > { %v394_v62 = vadd.f32 1.0, %v664_v59  ;;  %vm288_vm2 = vmor %vm286_vm0, %vm287_vm1 }
  0x4d   : > { %v283_v60 = vsub.f32 1.0, %v282_v57 }
  0x4e   : > { %667 = vrcp.f32 %v394_v62  ;;  %vm400_vm10 = vweird.f32 %v394_v62  ;;  %v406_v18 = vand.u32 2147483648, %v394_v62  ;;  %v404_v21 = vand.u32 2147483647, %v394_v62 }
  0x4f   : > { %v284_v63 = vmul.f32 %v662_v56, %v283_v60  ;;  %v666_v0 = vpop.eup %665 }
  0x50   : > { %v341_v4 = vmul.f32 %v666_v0, %v339_v55  ;;  %vm346_vm5 = vweird.f32 %v666_v0  ;;  %v407_v25 = vor.u32 1.1754944e-38, %v406_v18  ;;  %vm405_vm13 = vcmp.eq.f32.partialorder %v404_v21, 8.507059e+37 }
  0x51   : > { %v285_v2 = vadd.f32 %v662_v56, %v284_v63  ;;  %vm347_vm8 = vmor %vm345_vm4, %vm346_vm5 }
  0x52   : > { %v342_v7 = vsub.f32 1.0, %v341_v4 }
  0x53   : > { %v289_v6 = vsel %vm288_vm2, %v662_v56, %v285_v2 }
  0x54   : > { %v294_v9 = vsel %vm291_vm3, %v293_v1, %v289_v6  ;;  %v343_v12 = vmul.f32 %v666_v0, %v342_v7  ;;  %v668_v13 = vpop.eup %667 }
  0x55   : > { %v297_v10 = vrot.slane %v294_v9, 3  ;;  %v396_v17 = vmul.f32 %v668_v13, %v394_v62  ;;  %vm401_vm11 = vweird.f32 %v668_v13 }
  0x56   : > { %v344_v16 = vadd.f32 %v666_v0, %v343_v12  ;;  %vm402_vm12 = vmor %vm400_vm10, %vm401_vm11 }
  0x57   : > { %v299_v15 = vsel %vm298_vm6, %v294_v9, %v297_v10  ;;  %v397_v20 = vsub.f32 1.0, %v396_v17 }
  0x58   : > { %305 = vst.msk [vmem:[%s919_s28] ss:$4 sm:$0x3] %vm921_vm7, %v299_v15  ;;  %v348_v19 = vsel %vm347_vm8, %v666_v0, %v344_v16 }
  0x59   : > { %v353_v22 = vsel %vm350_vm9, %v352_v14, %v348_v19  ;;  %v398_v24 = vmul.f32 %v668_v13, %v397_v20 }
  0x5a   : > { %v356_v23 = vrot.slane %v353_v22, 3 }
  0x5b   : > { %v399_v27 = vadd.f32 %v668_v13, %v398_v24 }
  0x5c   : > { %v357_v26 = vsel %vm298_vm6, %v353_v22, %v356_v23 }
  0x5d   : > { %566 = vst.msk [vmem:[%s919_s28 + $0x1] ss:$4 sm:$0x3] %vm921_vm7, %v357_v26  ;;  %v403_v28 = vsel %vm402_vm12, %v668_v13, %v399_v27 }
  0x5e   : > { %v408_v29 = vsel %vm405_vm13, %v407_v25, %v403_v28 }
  0x5f   : > { %v411_v30 = vrot.slane %v408_v29, 3 }
  0x61   : > { %v412_v31 = vsel %vm298_vm6, %v408_v29, %v411_v30 }
  0x62   : > { %576 = vst.msk [vmem:[%s919_s28 + $0x2] ss:$4 sm:$0x3] %vm921_vm7, %v412_v31 }
  0x63 PF: > { %s18_s17 = sadd.s32 1, %s787_s17   ;;  %s965_s12 = smov %s771_s13 }
  0x64   : > { %p15_p2 = scmp.ge.s32.totalorder %s18_s17, 4   ;;  %s966_s13 = smov %s775_s14 }
  0x65   : > { %s967_s14 = smov %s884_s10  ;;  %s968_s15 = smov %s783_s16 }
  0x66   : > { %s969_s16 = smov %s971_s30  ;;  %17 = sbr.rel (!%p15_p2) target bundleno = 6 (0x6), region = 84 }
  0x6b   :  { %446 = vsyncpa [#allocation3], 1 }
  0x6c   :  { %448 = vsyncpa [#allocation3 + $0x1], 1 }
  0x6d   :  { %449 = vsyncpa [#allocation4], 1 }
  0x6e   :  { %451 = vsyncpa [#allocation4 + $0x1], 1 }
  0x6f   :  { %452 = vsyncpa [#allocation5], 1 }
  0x70   :  { %454 = vsyncpa [#allocation5 + $0x1], 1 }

</bundles_post_ra>
